<compile_context>
chip_gen: v6e
topology: v6e:2x2x1
jax: 0.10.0
libtpu: 0.0.40
codegen_flags: <defaults>
</compile_context>

<pallas_src>
import functools

import jax
import jax.numpy as jnp
from jax.experimental import pallas as pl
from jax.experimental.pallas import tpu as pltpu


def _fusion_kernel(o_ref, s_ref, p_ref, w_ref, m_ref, out_ref,
                   *, H, W, eps, slope, nb):
    # o_ref/s_ref/out_ref: (nb, C, HW); p_ref: (C, 8); w_ref: (C, 9C); m_ref: (4, HW)
    C = p_ref.shape[0]
    HW = H * W
    inv_hw = 1.0 / HW

    # Packed per-channel params (built in the wrapper), columns:
    #   0: 2*sigmoid(w_mix)*gamma1   1: 2*sigmoid(w_mix)*beta1
    #   2: 2*(1-sigmoid(w_mix))      3: gamma2                 4: beta2
    p = p_ref[...]
    a = p[:, 0:1]
    b = p[:, 1:2]
    c = p[:, 2:3]
    g2 = p[:, 3:4]
    b2 = p[:, 4:5]

    # Precomputed boundary masks of the flattened spatial axis.
    m = m_ref[...]
    w_first = m[0:1, :] != 0.0     # lane is column 0
    w_last = m[1:2, :] != 0.0      # lane is column W-1
    h_first = m[2:3, :] != 0.0     # lane is row 0
    h_last = m[3:4, :] != 0.0      # lane is row H-1

    w_stk = w_ref[...]             # (C, 9C) stacked conv taps

    for bi in range(nb):           # static unroll over batch elements in this block
        o = o_ref[bi]              # (C, HW) f32
        s = s_ref[bi]

        # InstanceNorm2d(o) (biased variance) with Mix + 2x folded into the affine:
        #   2*(o_bn*mf + s*(1-mf)) = o_hat*(2*mf*g1) + (2*mf*b1) + s*(2*(1-mf))
        mu = jnp.sum(o, axis=-1, keepdims=True) * inv_hw
        oc = o - mu
        var = jnp.sum(oc * oc, axis=-1, keepdims=True) * inv_hw
        o_hat = oc * jax.lax.rsqrt(var + eps)
        x = o_hat * a + b + s * c

        # LeakyReLU (ConvBlock.relu); slope in (0,1) so max() is exact.
        x = jnp.maximum(x, slope * x)

        # ---- ReflectionPad2d(1) + 3x3 conv (bias=False) on flat (C, HW) ----
        # 8 XLU lane-rolls + boundary selects build the 9 taps; the taps are
        # stacked along sublanes and contracted in ONE (C,9C)@(9C,HW) matmul.
        x_r = pltpu.roll(x, HW - 1, axis=1)   # value at (h, w+1)  (== jnp.roll(x,-1))
        x_l = pltpu.roll(x, 1, axis=1)        # value at (h, w-1)
        xc = [
            jnp.where(w_first, x_r, x_l),     # dx = -1 : reflect w=-1 -> w=1
            x,                                # dx =  0
            jnp.where(w_last, x_l, x_r),      # dx = +1 : reflect w=W  -> w=W-2
        ]
        cols = []
        for j in range(3):                    # j = dx + 1
            xcj = xc[j]
            up = pltpu.roll(xcj, W, axis=1)        # row h-1 (wrap fixed by select)
            dn = pltpu.roll(xcj, HW - W, axis=1)   # row h+1
            cols.append([
                jnp.where(h_first, dn, up),   # dy = -1 : reflect h=-1 -> h=1
                xcj,                          # dy =  0
                jnp.where(h_last, up, dn),    # dy = +1 : reflect h=H  -> h=H-2
            ])
        # stack order t = (dy+1)*3 + (dx+1), matching the host-side weight stacking
        taps = [cols[j][i] for i in range(3) for j in range(3)]
        stacked = jnp.concatenate(taps, axis=0)            # (9C, HW)
        y = jnp.dot(w_stk, stacked, preferred_element_type=jnp.float32)

        # InstanceNorm2d on the conv output (ConvBlock.bn, affine)
        mu2 = jnp.sum(y, axis=-1, keepdims=True) * inv_hw
        yc = y - mu2
        var2 = jnp.sum(yc * yc, axis=-1, keepdims=True) * inv_hw
        z = yc * jax.lax.rsqrt(var2 + eps) * g2 + b2

        # final LeakyReLU (second element of the merge Sequential)
        z = jnp.maximum(z, slope * z)
        out_ref[bi] = z.astype(out_ref.dtype)


def fusion_block(o, s, mix_w, gamma1, beta1, conv_w, gamma2, beta2,
                 *, eps=1e-5, slope=0.01, batch_per_step=1):
    """Fusion_Block(res=False) forward.

    o, s:          (N, C, H, W) float32
    mix_w:         scalar, the Mix.w parameter (init -0.8)
    gamma1, beta1: (C,) affine params of Fusion_Block.bn
    conv_w:        (C, C, 3, 3) ConvBlock.conv weight (bias=False)
    gamma2, beta2: (C,) affine params of ConvBlock.bn
    batch_per_step: batch elements per grid step (use >1 on single-TC parts
                    such as v5e/v6e to amortize per-step overhead; keep 1 on
                    v7x so both TensorCores get work when N >= 2).
    """
    N, C, H, W = o.shape
    HW = H * W
    nb = int(batch_per_step)
    assert N % nb == 0, "batch_per_step must divide N"

    # lane-dense flattened spatial axis
    o_flat = o.reshape(N, C, HW).astype(jnp.float32)
    s_flat = s.reshape(N, C, HW).astype(jnp.float32)

    # Fold Mix (sigmoid(w)) and the 2x factor into per-channel affine params,
    # packed (together with the second-norm affine) into one (C, 8) slab.
    mf = jax.nn.sigmoid(mix_w).astype(jnp.float32)
    params = jnp.zeros((C, 8), dtype=jnp.float32)
    params = params.at[:, 0].set(2.0 * mf * gamma1.astype(jnp.float32))
    params = params.at[:, 1].set(2.0 * mf * beta1.astype(jnp.float32))
    params = params.at[:, 2].set(2.0 * (1.0 - mf))
    params = params.at[:, 3].set(gamma2.astype(jnp.float32))
    params = params.at[:, 4].set(beta2.astype(jnp.float32))

    # conv weights stacked as (C_out, 9*C_in); block t = kh*3+kw holds conv_w[:,:,kh,kw]
    w_stk = jnp.transpose(conv_w, (0, 2, 3, 1)).reshape(C, 9 * C).astype(jnp.float32)

    # boundary masks of the flattened spatial axis (precomputed in the wrapper
    # so the kernel needs no iota / integer div / mod)
    pos = jnp.arange(HW, dtype=jnp.int32)
    col = pos % W
    row = pos // W
    masks = jnp.stack(
        [col == 0, col == W - 1, row == 0, row == H - 1]
    ).astype(jnp.float32)                                   # (4, HW)

    kernel = functools.partial(_fusion_kernel, H=H, W=W, eps=eps, slope=slope, nb=nb)

    out_flat = pl.pallas_call(
        kernel,
        out_shape=jax.ShapeDtypeStruct((N, C, HW), o.dtype),
        grid_spec=pltpu.PrefetchScalarGridSpec(
            num_scalar_prefetch=0,
            grid=(N // nb,),
            in_specs=[
                pl.BlockSpec((nb, C, HW), lambda n: (n, 0, 0)),     # o
                pl.BlockSpec((nb, C, HW), lambda n: (n, 0, 0)),     # s
                pl.BlockSpec((C, 8), lambda n: (0, 0)),             # packed affines
                pl.BlockSpec((C, 9 * C), lambda n: (0, 0)),         # stacked conv taps
                pl.BlockSpec((4, HW), lambda n: (0, 0)),            # boundary masks
            ],
            out_specs=pl.BlockSpec((nb, C, HW), lambda n: (n, 0, 0)),
        ),
        compiler_params=pltpu.CompilerParams(
            dimension_semantics=("parallel",),   # batch steps shard across v7x TCs
        ),
    )(o_flat, s_flat, params, w_stk, masks)

    return out_flat.reshape(N, C, H, W)


def fusion_block_reference(o, s, mix_w, gamma1, beta1, conv_w, gamma2, beta2,
                           eps=1e-5, slope=0.01):
    """Pure-JAX reference matching the PyTorch Fusion_Block(res=False) forward."""
    def inorm(x, g, b):
        mu = jnp.mean(x, axis=(2, 3), keepdims=True)
        var = jnp.mean((x - mu) ** 2, axis=(2, 3), keepdims=True)
        xn = (x - mu) * jax.lax.rsqrt(var + eps)
        return xn * g[None, :, None, None] + b[None, :, None, None]

    o_bn = inorm(o, gamma1, beta1)
    mf = jax.nn.sigmoid(mix_w)
    x = 2.0 * (o_bn * mf + s * (1.0 - mf))
    x = jnp.where(x > 0, x, slope * x)                        # LeakyReLU
    xp = jnp.pad(x, ((0, 0), (0, 0), (1, 1), (1, 1)), mode="reflect")
    y = jax.lax.conv_general_dilated(
        xp, conv_w, window_strides=(1, 1), padding="VALID",
        dimension_numbers=("NCHW", "OIHW", "NCHW"),
        precision=jax.lax.Precision.HIGHEST)
    y = inorm(y, gamma2, beta2)
    return jnp.where(y > 0, y, slope * y)                     # LeakyReLU


if __name__ == "__main__":
    key = jax.random.PRNGKey(0)
    N, C, H, W = 2, 8, 16, 16          # small shapes; H*W = 256 (lane-dense)

    ko, ks, k1, k2, k3, k4, k5 = jax.random.split(key, 7)
    o = jax.random.normal(ko, (N, C, H, W), dtype=jnp.float32)
    s = jax.random.normal(ks, (N, C, H, W), dtype=jnp.float32)

    mix_w = jnp.array(-0.8, dtype=jnp.float32)                      # Mix init
    gamma1 = 1.0 + 0.1 * jax.random.normal(k1, (C,), dtype=jnp.float32)
    beta1 = 0.1 * jax.random.normal(k2, (C,), dtype=jnp.float32)
    conv_w = 0.2 * jax.random.normal(k3, (C, C, 3, 3), dtype=jnp.float32)
    gamma2 = 1.0 + 0.1 * jax.random.normal(k4, (C,), dtype=jnp.float32)
    beta2 = 0.1 * jax.random.normal(k5, (C,), dtype=jnp.float32)

    ref = fusion_block_reference(o, s, mix_w, gamma1, beta1, conv_w, gamma2, beta2)
    ref = jax.block_until_ready(ref)

    # v7x-style launch: one batch element per grid step (N=2 -> both TCs busy).
    out1 = fusion_block(o, s, mix_w, gamma1, beta1, conv_w, gamma2, beta2,
                        batch_per_step=1)
    out1 = jax.block_until_ready(out1)
    assert out1.shape == o.shape
    err1 = float(jnp.max(jnp.abs(out1 - ref)))
    assert jnp.allclose(out1, ref, atol=2e-3, rtol=2e-3), (
        f"mismatch vs reference (batch_per_step=1, max abs err {err1})")

    # v5e/v6e-style launch: whole batch in one fat grid step.
    out2 = fusion_block(o, s, mix_w, gamma1, beta1, conv_w, gamma2, beta2,
                        batch_per_step=2)
    out2 = jax.block_until_ready(out2)
    err2 = float(jnp.max(jnp.abs(out2 - ref)))
    assert jnp.allclose(out2, ref, atol=2e-3, rtol=2e-3), (
        f"mismatch vs reference (batch_per_step=2, max abs err {err2})")

    print("KERNEL_OK")
</pallas_src>

<mosaic_0001>
module attributes {stable_mosaic.version = 11 : i64} {
  func.func @_fusion_kernel(%arg0: i32, %arg1: memref<1x8x256xf32, #tpu.memory_space<vmem>>, %arg2: memref<1x8x256xf32, #tpu.memory_space<vmem>>, %arg3: memref<8x8xf32, #tpu.memory_space<vmem>>, %arg4: memref<8x72xf32, #tpu.memory_space<vmem>>, %arg5: memref<4x256xf32, #tpu.memory_space<vmem>>, %arg6: memref<1x8x256xf32, #tpu.memory_space<vmem>>) attributes {dimension_semantics = [#tpu.dimension_semantics<parallel>], iteration_bounds = array<i64: 2>, scalar_prefetch = 0 : i64, scratch_operands = 0 : i64, tpu.core_type = #tpu.core_type<tc>, window_params = [{transform_indices = @transform_0, window_bounds = array<i64: 1, 8, 256>}, {transform_indices = @transform_1, window_bounds = array<i64: 1, 8, 256>}, {pipeline_mode = #tpu.pipeline_mode<synchronous>, transform_indices = @transform_2, window_bounds = array<i64: 8, 8>}, {pipeline_mode = #tpu.pipeline_mode<synchronous>, transform_indices = @transform_3, window_bounds = array<i64: 8, 72>}, {pipeline_mode = #tpu.pipeline_mode<synchronous>, transform_indices = @transform_4, window_bounds = array<i64: 4, 256>}, {transform_indices = @transform_5, window_bounds = array<i64: 1, 8, 256>}]} {
    %c0 = arith.constant 0 : index
    %c0_0 = arith.constant 0 : index
    %0 = vector.load %arg3[%c0, %c0_0] : memref<8x8xf32, #tpu.memory_space<vmem>>, vector<8x8xf32>
    %1 = vector.extract_strided_slice %0 {offsets = [0, 0], sizes = [8, 1], strides = [1, 1]} : vector<8x8xf32> to vector<8x1xf32>
    %2 = vector.extract_strided_slice %0 {offsets = [0, 1], sizes = [8, 1], strides = [1, 1]} : vector<8x8xf32> to vector<8x1xf32>
    %3 = vector.extract_strided_slice %0 {offsets = [0, 2], sizes = [8, 1], strides = [1, 1]} : vector<8x8xf32> to vector<8x1xf32>
    %4 = vector.extract_strided_slice %0 {offsets = [0, 3], sizes = [8, 1], strides = [1, 1]} : vector<8x8xf32> to vector<8x1xf32>
    %5 = vector.extract_strided_slice %0 {offsets = [0, 4], sizes = [8, 1], strides = [1, 1]} : vector<8x8xf32> to vector<8x1xf32>
    %c0_1 = arith.constant 0 : index
    %c0_2 = arith.constant 0 : index
    %6 = vector.load %arg5[%c0_1, %c0_2] : memref<4x256xf32, #tpu.memory_space<vmem>>, vector<4x256xf32>
    %7 = vector.extract_strided_slice %6 {offsets = [0, 0], sizes = [1, 256], strides = [1, 1]} : vector<4x256xf32> to vector<1x256xf32>
    %cst = arith.constant 0.000000e+00 : f32
    %8 = vector.broadcast %cst : f32 to vector<1x256xf32>
    %9 = arith.cmpf one, %7, %8 : vector<1x256xf32>
    %10 = vector.extract_strided_slice %6 {offsets = [1, 0], sizes = [1, 256], strides = [1, 1]} : vector<4x256xf32> to vector<1x256xf32>
    %cst_3 = arith.constant 0.000000e+00 : f32
    %11 = vector.broadcast %cst_3 : f32 to vector<1x256xf32>
    %12 = arith.cmpf one, %10, %11 : vector<1x256xf32>
    %13 = vector.extract_strided_slice %6 {offsets = [2, 0], sizes = [1, 256], strides = [1, 1]} : vector<4x256xf32> to vector<1x256xf32>
    %cst_4 = arith.constant 0.000000e+00 : f32
    %14 = vector.broadcast %cst_4 : f32 to vector<1x256xf32>
    %15 = arith.cmpf one, %13, %14 : vector<1x256xf32>
    %16 = vector.extract_strided_slice %6 {offsets = [3, 0], sizes = [1, 256], strides = [1, 1]} : vector<4x256xf32> to vector<1x256xf32>
    %cst_5 = arith.constant 0.000000e+00 : f32
    %17 = vector.broadcast %cst_5 : f32 to vector<1x256xf32>
    %18 = arith.cmpf one, %16, %17 : vector<1x256xf32>
    %c0_6 = arith.constant 0 : index
    %c0_7 = arith.constant 0 : index
    %19 = vector.load %arg4[%c0_6, %c0_7] : memref<8x72xf32, #tpu.memory_space<vmem>>, vector<8x72xf32>
    %c0_8 = arith.constant 0 : index
    %c0_9 = arith.constant 0 : index
    %c0_10 = arith.constant 0 : index
    %20 = vector.load %arg1[%c0_8, %c0_9, %c0_10] : memref<1x8x256xf32, #tpu.memory_space<vmem>>, vector<1x8x256xf32>
    %21 = vector.shape_cast %20 : vector<1x8x256xf32> to vector<8x256xf32>
    %c0_11 = arith.constant 0 : index
    %c0_12 = arith.constant 0 : index
    %c0_13 = arith.constant 0 : index
    %22 = vector.load %arg2[%c0_11, %c0_12, %c0_13] : memref<1x8x256xf32, #tpu.memory_space<vmem>>, vector<1x8x256xf32>
    %23 = vector.shape_cast %22 : vector<1x8x256xf32> to vector<8x256xf32>
    %cst_14 = arith.constant dense<0.000000e+00> : vector<8xf32>
    %24 = vector.multi_reduction <add>, %21, %cst_14 [1] : vector<8x256xf32> to vector<8xf32>
    %25 = vector.shape_cast %24 : vector<8xf32> to vector<8x1xf32>
    %cst_15 = arith.constant 3.906250e-03 : f32
    %26 = vector.broadcast %cst_15 : f32 to vector<8x1xf32>
    %27 = arith.mulf %25, %26 : vector<8x1xf32>
    %28 = vector.broadcast %27 : vector<8x1xf32> to vector<8x256xf32>
    %29 = arith.subf %21, %28 : vector<8x256xf32>
    %30 = arith.mulf %29, %29 : vector<8x256xf32>
    %cst_16 = arith.constant dense<0.000000e+00> : vector<8xf32>
    %31 = vector.multi_reduction <add>, %30, %cst_16 [1] : vector<8x256xf32> to vector<8xf32>
    %32 = vector.shape_cast %31 : vector<8xf32> to vector<8x1xf32>
    %cst_17 = arith.constant 3.906250e-03 : f32
    %33 = vector.broadcast %cst_17 : f32 to vector<8x1xf32>
    %34 = arith.mulf %32, %33 : vector<8x1xf32>
    %cst_18 = arith.constant 9.99999974E-6 : f32
    %35 = vector.broadcast %cst_18 : f32 to vector<8x1xf32>
    %36 = arith.addf %34, %35 : vector<8x1xf32>
    %37 = math.rsqrt %36 : vector<8x1xf32>
    %38 = vector.broadcast %37 : vector<8x1xf32> to vector<8x256xf32>
    %39 = arith.mulf %29, %38 : vector<8x256xf32>
    %40 = vector.broadcast %1 : vector<8x1xf32> to vector<8x256xf32>
    %41 = arith.mulf %39, %40 : vector<8x256xf32>
    %42 = vector.broadcast %2 : vector<8x1xf32> to vector<8x256xf32>
    %43 = arith.addf %41, %42 : vector<8x256xf32>
    %44 = vector.broadcast %3 : vector<8x1xf32> to vector<8x256xf32>
    %45 = arith.mulf %23, %44 : vector<8x256xf32>
    %46 = arith.addf %43, %45 : vector<8x256xf32>
    %cst_19 = arith.constant 0.00999999977 : f32
    %47 = vector.broadcast %cst_19 : f32 to vector<8x256xf32>
    %48 = arith.mulf %47, %46 : vector<8x256xf32>
    %49 = arith.maximumf %46, %48 : vector<8x256xf32>
    %c255_i32 = arith.constant 255 : i32
    %50 = tpu.dynamic_rotate %49 by %c255_i32 dim 1 : vector<8x256xf32>, i32 -> vector<8x256xf32>
    %c1_i32 = arith.constant 1 : i32
    %51 = tpu.dynamic_rotate %49 by %c1_i32 dim 1 : vector<8x256xf32>, i32 -> vector<8x256xf32>
    %52 = vector.shape_cast %9 : vector<1x256xi1> to vector<1x256xi1>
    %53 = vector.broadcast %52 : vector<1x256xi1> to vector<8x256xi1>
    %54 = arith.select %53, %50, %51 : vector<8x256xi1>, vector<8x256xf32>
    %55 = vector.shape_cast %12 : vector<1x256xi1> to vector<1x256xi1>
    %56 = vector.broadcast %55 : vector<1x256xi1> to vector<8x256xi1>
    %57 = arith.select %56, %51, %50 : vector<8x256xi1>, vector<8x256xf32>
    %c16_i32 = arith.constant 16 : i32
    %58 = tpu.dynamic_rotate %54 by %c16_i32 dim 1 : vector<8x256xf32>, i32 -> vector<8x256xf32>
    %c240_i32 = arith.constant 240 : i32
    %59 = tpu.dynamic_rotate %54 by %c240_i32 dim 1 : vector<8x256xf32>, i32 -> vector<8x256xf32>
    %60 = vector.shape_cast %15 : vector<1x256xi1> to vector<1x256xi1>
    %61 = vector.broadcast %60 : vector<1x256xi1> to vector<8x256xi1>
    %62 = arith.select %61, %59, %58 : vector<8x256xi1>, vector<8x256xf32>
    %63 = vector.shape_cast %18 : vector<1x256xi1> to vector<1x256xi1>
    %64 = vector.broadcast %63 : vector<1x256xi1> to vector<8x256xi1>
    %65 = arith.select %64, %58, %59 : vector<8x256xi1>, vector<8x256xf32>
    %c16_i32_20 = arith.constant 16 : i32
    %66 = tpu.dynamic_rotate %49 by %c16_i32_20 dim 1 : vector<8x256xf32>, i32 -> vector<8x256xf32>
    %c240_i32_21 = arith.constant 240 : i32
    %67 = tpu.dynamic_rotate %49 by %c240_i32_21 dim 1 : vector<8x256xf32>, i32 -> vector<8x256xf32>
    %68 = vector.shape_cast %15 : vector<1x256xi1> to vector<1x256xi1>
    %69 = vector.broadcast %68 : vector<1x256xi1> to vector<8x256xi1>
    %70 = arith.select %69, %67, %66 : vector<8x256xi1>, vector<8x256xf32>
    %71 = vector.shape_cast %18 : vector<1x256xi1> to vector<1x256xi1>
    %72 = vector.broadcast %71 : vector<1x256xi1> to vector<8x256xi1>
    %73 = arith.select %72, %66, %67 : vector<8x256xi1>, vector<8x256xf32>
    %c16_i32_22 = arith.constant 16 : i32
    %74 = tpu.dynamic_rotate %57 by %c16_i32_22 dim 1 : vector<8x256xf32>, i32 -> vector<8x256xf32>
    %c240_i32_23 = arith.constant 240 : i32
    %75 = tpu.dynamic_rotate %57 by %c240_i32_23 dim 1 : vector<8x256xf32>, i32 -> vector<8x256xf32>
    %76 = vector.shape_cast %15 : vector<1x256xi1> to vector<1x256xi1>
    %77 = vector.broadcast %76 : vector<1x256xi1> to vector<8x256xi1>
    %78 = arith.select %77, %75, %74 : vector<8x256xi1>, vector<8x256xf32>
    %79 = vector.shape_cast %18 : vector<1x256xi1> to vector<1x256xi1>
    %80 = vector.broadcast %79 : vector<1x256xi1> to vector<8x256xi1>
    %81 = arith.select %80, %74, %75 : vector<8x256xi1>, vector<8x256xf32>
    %82 = tpu.concatenate %62, %70, %78, %54, %49, %57, %65, %73, %81 in 0 : vector<8x256xf32>, vector<8x256xf32>, vector<8x256xf32>, vector<8x256xf32>, vector<8x256xf32>, vector<8x256xf32>, vector<8x256xf32>, vector<8x256xf32>, vector<8x256xf32> -> vector<72x256xf32>
    %cst_24 = arith.constant dense<0.000000e+00> : vector<8x256xf32>
    %83 = tpu.matmul %19, %82, %cst_24 {dimension_numbers = #tpu.dot_dimension_numbers<[1], [0], [0], [1], [0, 0, 1, 1], [], []>} : vector<8x72xf32>, vector<72x256xf32>, vector<8x256xf32> -> vector<8x256xf32>
    %cst_25 = arith.constant dense<0.000000e+00> : vector<8xf32>
    %84 = vector.multi_reduction <add>, %83, %cst_25 [1] : vector<8x256xf32> to vector<8xf32>
    %85 = vector.shape_cast %84 : vector<8xf32> to vector<8x1xf32>
    %cst_26 = arith.constant 3.906250e-03 : f32
    %86 = vector.broadcast %cst_26 : f32 to vector<8x1xf32>
    %87 = arith.mulf %85, %86 : vector<8x1xf32>
    %88 = vector.broadcast %87 : vector<8x1xf32> to vector<8x256xf32>
    %89 = arith.subf %83, %88 : vector<8x256xf32>
    %90 = arith.mulf %89, %89 : vector<8x256xf32>
    %cst_27 = arith.constant dense<0.000000e+00> : vector<8xf32>
    %91 = vector.multi_reduction <add>, %90, %cst_27 [1] : vector<8x256xf32> to vector<8xf32>
    %92 = vector.shape_cast %91 : vector<8xf32> to vector<8x1xf32>
    %cst_28 = arith.constant 3.906250e-03 : f32
    %93 = vector.broadcast %cst_28 : f32 to vector<8x1xf32>
    %94 = arith.mulf %92, %93 : vector<8x1xf32>
    %cst_29 = arith.constant 9.99999974E-6 : f32
    %95 = vector.broadcast %cst_29 : f32 to vector<8x1xf32>
    %96 = arith.addf %94, %95 : vector<8x1xf32>
    %97 = math.rsqrt %96 : vector<8x1xf32>
    %98 = vector.broadcast %97 : vector<8x1xf32> to vector<8x256xf32>
    %99 = arith.mulf %89, %98 : vector<8x256xf32>
    %100 = vector.broadcast %4 : vector<8x1xf32> to vector<8x256xf32>
    %101 = arith.mulf %99, %100 : vector<8x256xf32>
    %102 = vector.broadcast %5 : vector<8x1xf32> to vector<8x256xf32>
    %103 = arith.addf %101, %102 : vector<8x256xf32>
    %cst_30 = arith.constant 0.00999999977 : f32
    %104 = vector.broadcast %cst_30 : f32 to vector<8x256xf32>
    %105 = arith.mulf %104, %103 : vector<8x256xf32>
    %106 = arith.maximumf %103, %105 : vector<8x256xf32>
    %c0_31 = arith.constant 0 : index
    %c0_32 = arith.constant 0 : index
    %c0_33 = arith.constant 0 : index
    %107 = vector.load %arg6[%c0_31, %c0_32, %c0_33] : memref<1x8x256xf32, #tpu.memory_space<vmem>>, vector<1x8x256xf32>
    %108 = vector.shape_cast %107 : vector<1x8x256xf32> to vector<8x256xf32>
    %109 = vector.shape_cast %106 : vector<8x256xf32> to vector<1x8x256xf32>
    tpu.vector_store %arg6[%c0_31, %c0_32, %c0_33], %109 {strides = array<i32>} : memref<1x8x256xf32, #tpu.memory_space<vmem>>, vector<1x8x256xf32>,
    return
  }
  func.func @transform_0(%arg0: i32) -> (i32, i32, i32) {
    %c0_i32 = arith.constant 0 : i32
    %c0_i32_0 = arith.constant 0 : i32
    %c0_i32_1 = arith.constant 0 : i32
    return %arg0, %c0_i32, %c0_i32_0 : i32, i32, i32
  }
  func.func @transform_1(%arg0: i32) -> (i32, i32, i32) {
    %c0_i32 = arith.constant 0 : i32
    %c0_i32_0 = arith.constant 0 : i32
    %c0_i32_1 = arith.constant 0 : i32
    return %arg0, %c0_i32, %c0_i32_0 : i32, i32, i32
  }
  func.func @transform_2(%arg0: i32) -> (i32, i32) {
    %c0_i32 = arith.constant 0 : i32
    %c0_i32_0 = arith.constant 0 : i32
    %c0_i32_1 = arith.constant 0 : i32
    return %c0_i32, %c0_i32_0 : i32, i32
  }
  func.func @transform_3(%arg0: i32) -> (i32, i32) {
    %c0_i32 = arith.constant 0 : i32
    %c0_i32_0 = arith.constant 0 : i32
    %c0_i32_1 = arith.constant 0 : i32
    return %c0_i32, %c0_i32_0 : i32, i32
  }
  func.func @transform_4(%arg0: i32) -> (i32, i32) {
    %c0_i32 = arith.constant 0 : i32
    %c0_i32_0 = arith.constant 0 : i32
    %c0_i32_1 = arith.constant 0 : i32
    return %c0_i32, %c0_i32_0 : i32, i32
  }
  func.func @transform_5(%arg0: i32) -> (i32, i32, i32) {
    %c0_i32 = arith.constant 0 : i32
    %c0_i32_0 = arith.constant 0 : i32
    %c0_i32_1 = arith.constant 0 : i32
    return %arg0, %c0_i32, %c0_i32_0 : i32, i32, i32
  }
}

</mosaic_0001>

<bundles_post_ra>
// kernel: tpu_custom_call.1
= control target key start
LH: loop header
LB: loop body
LE: loop exit
PB: predicated region body
PF: predicated region fallthrough
CT: control target
= control target key end

     0   :  { %s1490_s0 = inlined_call_operand.hbm [shape: f32[2,8,256], index: 0, kind: input, shape index: {}]   ;;  %s1491_s1 = inlined_call_operand.hbm [shape: f32[2,8,256], index: 1, kind: input, shape index: {}]   ;;  %s1492_s2 = inlined_call_operand.hbm [shape: f32[8,8], index: 2, kind: input, shape index: {}]   ;;  %s1493_s3 = inlined_call_operand.hbm [shape: f32[8,72], index: 3, kind: input, shape index: {}]   ;;  %s1494_s4 = inlined_call_operand.hbm [shape: f32[4,256], index: 4, kind: input, shape index: {}]   ;;  %s1495_s5 = inlined_call_operand.hbm [shape: f32[2,8,256], index: 5, kind: output, shape index: {}]  }
   0x1   :  { %1500 = sst [smem:[#allocation17_spill]] %s1492_s2 }
   0x2   :  { %1501 = sst [smem:[#allocation18_spill]] %s1493_s3 }
   0x3   :  { %10 = vsyncpa [#allocation3], 0 }
   0x4   :  { %12 = vsyncpa [#allocation3 + $0x1], 0 }
   0x5   :  { %13 = vsyncpa [#allocation6], 0 }
   0x6   :  { %15 = vsyncpa [#allocation6 + $0x1], 0 }
   0x7   :  { %16 = vsyncpa [#allocation9], 0 }
   0x8   :  { %17 = vsyncpa [#allocation4], 0 }
   0x9   :  { %19 = vsyncpa [#allocation4 + $0x1], 0  ;;  %s1141_s18 = smov 0   ;;  %s1143_s19 = smov 0  }
   0xa   :  { %s1145_s20 = smov 0   ;;  %s1147_s21 = smov 0  }
   0xb LB: > { %s1162_s22 = sadd.s32 4294967295, %s1093_s21   ;;  %s753_s23 = sadd.s32 4294967294, %s1093_s21   ;;  %s1093_s21 = sphi %s1147_s21, %s1527_s21   ;;  %s1089_s20 = sphi %s1145_s20, %s1526_s20   ;;  %s1085_s19 = sphi %s1143_s19, %s1525_s19   ;;  %s1081_s18 = sphi %s1141_s18, %s1524_s18  }
   0xc   : > { %p45_p0 = scmp.ne.s32.totalorder %s1085_s19, %s1081_s18  ;;  %p1496_p1 = scmp.eq.s32.totalorder %s1162_s22, 0 }
   0xd   : > { %p164_p3 = scmp.eq.s32.totalorder %s753_s23, 1  ;;  %p754_p5 = scmp.ge.s32.totalorder %s1093_s21, 1 }
   0xe   : > { %p1171_p4 = por %p1496_p1, %p45_p0  ;;  %p171_p7 = scmp.lt.s32.totalorder %s1093_s21, 3 }
   0xf   : > { %p1176_p6 = por %p164_p3, %p45_p0  ;;  %s1095_s27 = smov [#allocation7]  }
  0x10   : > { %s1502_s24 = scalar_select %p1171_p4, 1, 0 }
  0x11   : > { %s1503_s25 = scalar_select %p1176_p6, 1, 0 }
  0x12   : > { %p1181_p8 = pnand %p754_p5, %p171_p7  ;;  %s184_s28 = sshll.u32 %s1095_s27, 4  ;;  %s185_s28 = int_to_ptr.vmem [resolvable:$true] %s184_s28 }
  0x13   : > { %s1096_s29 = smov [#allocation8]   ;;  %s1097_s7 = smov [#allocation10]  }
  0x14   : > { %s1504_s26 = scalar_select %p1181_p8, 1, 0 }
  0x15   : > { %p799_p10 = pneg %p1181_p8  ;;  %s195_s30 = sshll.u32 %s1096_s29, 4  ;;  %s196_s30 = int_to_ptr.vmem [resolvable:$true] %s195_s30 }
  0x16   : > { %s206_s8 = sshll.u32 %s1097_s7, 4  ;;  %s894_s9 = scalar_lea.vmem %s185_s28, 128  ;;  %s1194_s8 = int_to_ptr.vmem [resolvable:$true] %s206_s8 }
  0x17   : > { %p1190_p11 = pnand %p799_p10, %p1496_p1  ;;  %p895_p13 = scmp.ne.s32.totalorder %s185_s28, %s894_s9 }
  0x18   : > { %p902_p5 = scmp.lt.s32.totalorder %s185_s28, %s185_s28  ;;  %p903_p7 = scmp.lt.s32.totalorder %s894_s9, %s894_s9 }
  0x19   : > { %p885_p12 = pneg %p1190_p11 }
  0x1a   : > { %p904_p10 = por %p903_p7, %p902_p5 }
  0x1b   : > { %p897_p0 = pnand %p895_p13, %p885_p12 }
  0x1d   : > { %p898_p3 = pneg %p897_p0 }
  0x1f   : > { %p905_p9 = pnand %p904_p10, %p898_p3 }
  0x21   : > { %908 = shalt.err (!%p905_p9)
}
  0x22   : > { %s1506_s2 = sld [smem:[#allocation17_spill]]  ;;  %s920_s12 = scalar_lea.vmem %s196_s30, 128 }
  0x23   : > { %p921_p1 = scmp.ne.s32.totalorder %s196_s30, %s920_s12  ;;  %p928_p13 = scmp.lt.s32.totalorder %s196_s30, %s196_s30 }
  0x24   : > { %p929_p0 = scmp.lt.s32.totalorder %s920_s12, %s920_s12 }
  0x25   : > { %p923_p2 = pnand %p921_p1, %p885_p12 }
  0x26   : > { %p930_p4 = por %p929_p0, %p928_p13 }
  0x27   : > { %p924_p6 = pneg %p923_p2 }
  0x28   : > { %802 = dma.hbm_to_vmem [thread:$0]  (!%p1190_p11), %s1506_s2, 128, %s185_s28, [#allocation6]  }
  0x29   : > { %p931_p8 = pnand %p930_p4, %p924_p6 }
  0x2b   : > { %934 = shalt.err (!%p931_p8)
}
  0x2c   : > { %s1507_s3 = sld [smem:[#allocation18_spill]]  ;;  %s946_s15 = scalar_lea.vmem %s1194_s8, 128 }
  0x2d   : > { %p947_p9 = scmp.ne.s32.totalorder %s1194_s8, %s946_s15  ;;  %p954_p3 = scmp.lt.s32.totalorder %s1194_s8, %s1194_s8 }
  0x2e   : > { %p955_p4 = scmp.lt.s32.totalorder %s946_s15, %s946_s15 }
  0x2f   : > { %p949_p1 = pnand %p947_p9, %p885_p12 }
  0x30   : > { %p956_p6 = por %p955_p4, %p954_p3 }
  0x31   : > { %p950_p2 = pneg %p949_p1 }
  0x32   : > { %805 = dma.hbm_to_vmem [thread:$0]  (!%p1190_p11), %s1507_s3, 128, %s196_s30, [#allocation9]  }
  0x33   : > { %p957_p8 = pnand %p956_p6, %p950_p2 }
  0x35   : > { %960 = shalt.err (!%p957_p8)
}
  0x36   : > { %808 = dma.hbm_to_vmem [thread:$0]  (!%p1190_p11), %s1494_s4, 128, %s1194_s8, [#allocation9]  }
  0x37   : > { %s1228_s23 = sadd.s32 1, %s1093_s21   ;;  %s32_s28 = sadd.s32 1, %s1089_s20 }
  0x38   : > { %s29_s27 = ssub.s32 %s1093_s21, %s1228_s23  ;;  %p39_p5 = scmp.ne.s32.totalorder %s1089_s20, %s1085_s19 }
  0x39   : > { %p30_p12 = scmp.eq.s32.totalorder %s29_s27, 0  ;;  %p40_p7 = scmp.eq.s32.totalorder %s1093_s21, 0 }
  0x3a   : > { %p823_p10 = scmp.lt.s32.totalorder %s1093_s21, 2  ;;  %p1508_p0 = scmp.eq.s32.totalorder %s1162_s22, 1 }
  0x3b   : > { %s1238_s29 = scalar_select %p30_p12, %s1089_s20, %s32_s28  }
  0x3c   : > { %p41_p13 = por %p40_p7, %p39_p5  ;;  %p1242_p9 = por %p1508_p0, %p39_p5 }
  0x3d   : > { %s217_s6 = sand.u32 1, %s1089_s20   ;;  %s778_s7 = sshll.u32 %s1093_s21, 8 }
  0x3e   : > { %s1509_s30 = scalar_select %p1242_p9, 1, 0 }
  0x3f   : > { %s1248_s8 = sshll.u32 %s217_s6, 4  ;;  %s1253_s11 = scalar_lea.hbm %s1490_s0, %s778_s7 }
  0x40   : > { %s221_s12 = scalar_lea.vmem [#allocation2], %s1248_s8  ;;  %p1256_p11 = pnand %p823_p10, %p41_p13 }
  0x41   : > { %s229_s13 = sshll.u32 %s221_s12, 4  ;;  %s1263_s17 = scalar_lea.hbm %s1491_s1, %s778_s7  ;;  %s230_s13 = int_to_ptr.vmem [resolvable:$true] %s229_s13 }
  0x42   : > { %s218_s27 = scalar_lea.sflag [#allocation3], %s217_s6  ;;  %s961_s28 = scalar_lea.hbm %s1253_s11, 256 }
  0x43   : > { %p962_p1 = scmp.ne.s32.totalorder %s1253_s11, %s961_s28  ;;  %p963_p2 = pneg %p1256_p11 }
  0x44   : > { %s966_s12 = scalar_lea.hbm %s1490_s0, 512  ;;  %p967_p6 = scmp.lt.s32.totalorder %s1253_s11, %s1490_s0 }
  0x45   : > { %p964_p3 = pnand %p963_p2, %p962_p1  ;;  %p968_p8 = scmp.lt.s32.totalorder %s966_s12, %s961_s28 }
  0x47   : > { %p965_p4 = pneg %p964_p3  ;;  %p969_p12 = por %p968_p8, %p967_p6 }
  0x49   : > { %p970_p5 = pnand %p969_p12, %p965_p4 }
  0x4b   : > { %973 = shalt.err (!%p970_p5)
}
  0x4c   : > { %s974_s6 = scalar_lea.vmem %s230_s13, 256  ;;  %s1098_s7 = smov [#allocation2]  }
  0x4d   : > { %p975_p7 = scmp.ne.s32.totalorder %s230_s13, %s974_s6  ;;  %s979_s15 = sshll.u32 %s1098_s7, 4  ;;  %s980_s15 = int_to_ptr.vmem [resolvable:$false] %s979_s15 }
  0x4e   : > { %s981_s16 = scalar_lea.vmem %s980_s15, 512  ;;  %p982_p0 = scmp.lt.s32.totalorder %s230_s13, %s980_s15 }
  0x4f   : > { %p977_p10 = pnand %p975_p7, %p963_p2  ;;  %p983_p1 = scmp.lt.s32.totalorder %s981_s16, %s974_s6 }
  0x51   : > { %p978_p13 = pneg %p977_p10  ;;  %p984_p3 = por %p983_p1, %p982_p0 }
  0x53   : > { %p985_p9 = pnand %p984_p3, %p978_p13 }
  0x55   : > { %988 = shalt.err (!%p985_p9)
}
  0x56   : > { %812 = dma.hbm_to_vmem [thread:$0]  (!%p1256_p11), %s1253_s11, 256, %s230_s13, %s218_s27  }
  0x57   : > { %s236_s2 = sand.u32 1, %s1093_s21   ;;  %s240_s3 = scalar_lea.vmem [#allocation5], %s1248_s8 }
  0x58   : > { %s248_s28 = sshll.u32 %s240_s3, 4  ;;  %s237_s9 = scalar_lea.sflag [#allocation6], %s236_s2  ;;  %s249_s28 = int_to_ptr.vmem [resolvable:$true] %s248_s28 }
  0x59   : > { %s989_s10 = scalar_lea.hbm %s1263_s17, 256  ;;  %s994_s7 = scalar_lea.hbm %s1491_s1, 512 }
  0x5a   : > { %p990_p4 = scmp.ne.s32.totalorder %s1263_s17, %s989_s10  ;;  %p995_p8 = scmp.lt.s32.totalorder %s1263_s17, %s1491_s1 }
  0x5b   : > { %p996_p12 = scmp.lt.s32.totalorder %s994_s7, %s989_s10 }
  0x5c   : > { %p992_p9 = pnand %p990_p4, %p963_p2 }
  0x5d   : > { %p997_p5 = por %p996_p12, %p995_p8 }
  0x5e   : > { %p993_p6 = pneg %p992_p9 }
  0x60   : > { %p998_p7 = pnand %p997_p5, %p993_p6 }
  0x62   : > { %1001 = shalt.err (!%p998_p7)
}
  0x63   : > { %s1002_s8 = scalar_lea.vmem %s249_s28, 256  ;;  %s1099_s11 = smov [#allocation5]  }
  0x64   : > { %p1003_p10 = scmp.ne.s32.totalorder %s249_s28, %s1002_s8  ;;  %s1007_s13 = sshll.u32 %s1099_s11, 4  ;;  %s1008_s13 = int_to_ptr.vmem [resolvable:$false] %s1007_s13 }
  0x65   : > { %s1009_s27 = scalar_lea.vmem %s1008_s13, 512  ;;  %p1010_p1 = scmp.lt.s32.totalorder %s249_s28, %s1008_s13 }
  0x66   : > { %p1005_p13 = pnand %p1003_p10, %p963_p2  ;;  %p1011_p3 = scmp.lt.s32.totalorder %s1009_s27, %s1002_s8 }
  0x68   : > { %p1006_p0 = pneg %p1005_p13  ;;  %p1012_p4 = por %p1011_p3, %p1010_p1 }
  0x6a   : > { %p1013_p9 = pnand %p1012_p4, %p1006_p0 }
  0x6c   : > { %1016 = shalt.err (!%p1013_p9)
}
  0x6d   : > { %815 = dma.hbm_to_vmem [thread:$0]  (!%p1256_p11), %s1263_s17, 256, %s249_s28, %s237_s9  }
  0x6e   : > { %p1511_p6 = scmp.ne.s32.totalorder %s1504_s26, 0 }
  0x6f   : > { %s1308_s2 = sand.u32 (!%p1511_p6), 1, %s1085_s19   ;;  %p1512_p2 = scmp.ne.s32.totalorder (!%p1511_p6), %s1502_s24, 0 }
  0x70   : > { %257 = sbr.rel (%p1511_p6) target bundleno = 1247 (0x4df), region = 40  ;;  %s1311_s3 = sshll.u32 (!%p1511_p6), %s1308_s2, 4 }
  0x71   : > { %s260_s10 = scalar_lea.sflag (!%p1511_p6), [#allocation3], %s1308_s2  ;;  %s263_s12 = scalar_lea.vmem (!%p1511_p6), [#allocation2], %s1311_s3 }
  0x75   : > { %1060 = dma.done.wait (%p1512_p2), %s260_s10, 256  }
  0x76   : > { %1062 = vsyncadd (%p1512_p2), %s260_s10, 4294967040  ;;  %s268_s26 = sand.u32 1, %s1162_s22   ;;  %s272_s17 = scalar_lea.vmem [#allocation5], %s1311_s3 }
  0x77   : > { %s269_s14 = scalar_lea.sflag [#allocation6], %s268_s26 }
  0x78   : > { %1064 = dma.done.wait (%p1512_p2), %s269_s14, 256  }
  0x79   : > { %1066 = vsyncadd (%p1512_p2), %s269_s14, 4294967040  ;;  %p1513_p11 = scmp.eq.s32.totalorder %s1162_s22, 0 }
  0x7b   : > { %1068 = dma.done.wait (%p1513_p11), [#allocation6], 128   ;;  %p1514_p8 = pmov %p1513_p11 }
  0x7d   : > { %1070 = vsyncadd (%p1514_p8), [#allocation6], 4294967168  ;;  %p1515_p12 = pmov %p1514_p8 }
  0x7e   : > { %p1516_p5 = pmov %p1514_p8 }
  0x7f   : > { %1072 = dma.done.wait (%p1515_p12), [#allocation9], 256  }
  0x80   : > { %1074 = vsyncadd (%p1516_p5), [#allocation9], 4294967040  ;;  %v320_v0 = vld [vmem:[%s263_s12] sm:$0xff]  ;;  %v321_v1 = vld [vmem:[%s263_s12 + $0x8] sm:$0xff]  ;;  %v1100_v4 = vmov 0   ;;  %v1101_v5 = vmov 2   ;;  %v369_v38 = vlaneseq }
  0x81   : > { %v324_v2 = vadd.f32 %v321_v1, %v320_v0  ;;  %v1333_v3 = vld [vmem:[#allocation7] sm:$0xff]  ;;  %873 = vset.pattern.permute.xlu1 %v1100_v4  ;;  %875 = vset.pattern.permute.xlu0 %v1101_v5  ;;  %v1102_v6 = vmov 1   ;;  %v323_v20 = vld [vmem:[%s272_s17 + $0x8] sm:$0xff]  ;;  %v317_v37 = vld [vmem:[#allocation10] sm:$0xff]  ;;  %s1103_s24 = smov 112   ;;  %s1104_s28 = smov 127  }
  0x82   : > { %342 = vperm.xlu1 %873, %v1333_v3   ;;  %v322_v19 = vld [vmem:[%s272_s17] sm:$0xff]  ;;  %vm318_vm0 = vcmp.ne.f32.partialorder %v317_v37, 0.0  ;;  %v383_v39 = vshrl.u32 %v369_v38, 7  ;;  %s1105_s9 = smov 1   ;;  %s1106_s6 = smov 16   ;;  %v1362_v61 = vand.u32 127, %v369_v38 }
  0x83   : > { %325 = vadd.xlane.f32.xlu0 %v324_v2  ;;  %v381_v43 = vsel %vm318_vm0, 1, %v1100_v4  ;;  %vm508_vm13 = vcmask 588800   ;;  %s780_s7 = sshll.u32 %s1162_s22, 8  ;;  %s315_s15 = scalar_lea.vmem [#allocation11], %s1311_s3 }
  0x84   : > { %v458_v40 = vsub.s32 3, %v383_v39  ;;  %v462_v41 = vsub.s32 7, %v383_v39  ;;  %v438_v42 = vsub.s32 2, %v383_v39  ;;  %v442_v44 = vsub.s32 6, %v383_v39  ;;  %s632_s16 = sshll.u32 %s315_s15, 4  ;;  %s1453_s13 = scalar_lea.hbm %s1495_s5, %s780_s7  ;;  %s633_s16 = int_to_ptr.vmem [resolvable:$true] %s632_s16 }
  0x85   : > { %v404_v53 = vsub.s32 1, %v383_v39  ;;  %v388_v54 = vsub.s32 4, %v383_v39  ;;  %v408_v58 = vsub.s32 5, %v383_v39  ;;  %v384_v60 = vsub.s32 0, %v383_v39  ;;  %s618_s27 = scalar_lea.sflag [#allocation4], %s1308_s2  ;;  %s1017_s10 = scalar_lea.vmem %s633_s16, 256 }
  0x86   : > { %874 = vset.pattern.permute.xlu1 %v1102_v6  ;;  %v463_v45 = vrot.slane %v381_v43, %v462_v41  ;;  %v459_v46 = vrot.slane %v381_v43, %v458_v40  ;;  %v439_v47 = vrot.slane %v381_v43, %v438_v42  ;;  %v443_v48 = vrot.slane %v381_v43, %v442_v44  ;;  %p1018_p7 = scmp.ne.s32.totalorder %s633_s16, %s1017_s10  ;;  %p1521_p10 = scmp.ne.s32.totalorder %s1509_s30, 0 }
  0x87   : > { %348 = vperm.xlu1 %874, %v1333_v3   ;;  %v405_v56 = vrot.slane %v381_v43, %v404_v53  ;;  %v389_v57 = vrot.slane %v381_v43, %v388_v54  ;;  %vm371_vm1 = vcmp.lt.s32.totalorder %v1362_v61, 127  ;;  %vm378_vm2 = vcmp.lt.s32.totalorder %v1362_v61, 1  ;;  %s1110_s22 = smov [#allocation11]  }
  0x88   : > { %v471_v49 = vrot.slane %v463_v45, %v458_v40  ;;  %v1351_v50 = vrot.slane %v459_v46, %v458_v40  ;;  %v1353_v51 = vrot.slane %v439_v47, %v438_v42  ;;  %v451_v52 = vrot.slane %v443_v48, %v438_v42  ;;  %p1019_p13 = pnand %p1018_p7, %p1521_p10  ;;  %s1021_s3 = sshll.u32 %s1110_s22, 4  ;;  %s1022_s3 = int_to_ptr.vmem [resolvable:$false] %s1021_s3 }
  0x89   : > { %v413_v62 = vrot.slane %v405_v56, %v404_v53  ;;  %v397_v63 = vrot.slane %v389_v57, %v384_v60  ;;  %vm426_vm6 = vcmp.lt.s32.totalorder %v1362_v61, 16  ;;  %vm433_vm7 = vcmp.lt.s32.totalorder %v1362_v61, 112  ;;  %s1023_s12 = scalar_lea.vmem %s1022_s3, 512  ;;  %p1024_p1 = scmp.lt.s32.totalorder %s633_s16, %s1022_s3 }
  0x8a   : > { %vm1381_vm8 = vcmp.eq.s32.totalorder %v471_v49, 1  ;;  %vm472_vm9 = vcmp.eq.s32.totalorder %v1351_v50, 1  ;;  %vm1386_vm10 = vcmp.eq.s32.totalorder %v451_v52, 1  ;;  %vm452_vm11 = vcmp.eq.s32.totalorder %v1353_v51, 1  ;;  %v319_v50 = vld [vmem:[#allocation8] sm:$0xff]  ;;  %p1020_p0 = pneg %p1019_p13  ;;  %p1025_p3 = scmp.lt.s32.totalorder %s1023_s12, %s1017_s10 }
  0x8b   : > { %vm418_vm3 = vcmp.eq.s32.totalorder %v413_v62, 1  ;;  %vm399_vm4 = vcmp.eq.s32.totalorder %v397_v63, 1 }
  0x8c   : > { %p1026_p4 = por %p1025_p3, %p1024_p1 }
  0x8e   : > { %p1027_p9 = pnand %p1026_p4, %p1020_p0 }
  0xfd   : > { %v343_v17 = vpop.permute.xlu1 %342 }
 0x102   : > { %v349_v24 = vpop.permute.xlu1 %348 }
 0x10c   : > { %v326_v7 = vpop.xlane.xlu0 %325 }
 0x10d   : > { %v327_v8 = vmul.f32 0.00390625, %v326_v7 }
 0x10f   : > { %v328_v9 = vsub.f32 %v320_v0, %v327_v8  ;;  %v329_v10 = vsub.f32 %v321_v1, %v327_v8  ;;  %v409_v0 = vrot.slane %v381_v43, %v408_v58 }
 0x111   : > { %v330_v11 = vmul.f32 %v328_v9, %v328_v9  ;;  %v331_v12 = vmul.f32 %v329_v10, %v329_v10  ;;  %v417_v2 = vrot.slane %v409_v0, %v404_v53 }
 0x113   : > { %v332_v13 = vadd.f32 %v331_v12, %v330_v11  ;;  %vm419_vm5 = vcmp.eq.s32.totalorder %v417_v2, 1 }
 0x115   : > { %333 = vadd.xlane.f32.xlu0 %v332_v13  ;;  %v385_v13 = vrot.slane %v381_v43, %v384_v60 }
 0x12b   : > { %354 = vperm.xlu0 %875, %v1333_v3  }
 0x19e   : > { %v334_v14 = vpop.xlane.xlu0 %333 }
 0x19f   : > { %v335_v15 = vmul.f32 0.00390625, %v334_v14 }
 0x1a1   : > { %v336_v16 = vadd.f32 1e-05, %v335_v15  ;;  %v393_v15 = vrot.slane %v385_v13, %v384_v60  ;;  %v1108_v60 = vmov 3  }
 0x1a2   : > { %876 = vset.pattern.permute.xlu0 %v1108_v60 }
 0x1a3   : > { %879 = vrsqrt.f32 %v336_v16  ;;  %vm398_vm12 = vcmp.eq.s32.totalorder %v393_v15, 1 }
 0x1a6   : > { %v355_v21 = vpop.permute.xlu0 %354 }
 0x1a7   : > { %v357_v27 = vmul.f32 %v355_v21, %v322_v19  ;;  %v358_v28 = vmul.f32 %v355_v21, %v323_v20 }
 0x1b0   : > { %v880_v18 = vpop.eup %879 }
 0x1b1   : > { %v338_v22 = vmul.f32 %v880_v18, %v328_v9  ;;  %v339_v23 = vmul.f32 %v880_v18, %v329_v10 }
 0x1b3   : > { %v345_v25 = vmul.f32 %v343_v17, %v338_v22  ;;  %v346_v26 = vmul.f32 %v343_v17, %v339_v23 }
 0x1b5   : > { %v351_v29 = vadd.f32 %v349_v24, %v345_v25  ;;  %v352_v30 = vadd.f32 %v349_v24, %v346_v26 }
 0x1b7   : > { %v359_v31 = vadd.f32 %v357_v27, %v351_v29  ;;  %v360_v32 = vadd.f32 %v358_v28, %v352_v30  ;;  %v1107_v29 = vmov 0.0  }
 0x1b8   : > { %576 = vmatprep.mubr.f32.mxu0 %v1107_v29 }
 0x1b9   : > { %v361_v33 = vmul.f32 0.01, %v359_v31  ;;  %v362_v34 = vmul.f32 0.01, %v360_v32 }
 0x1bb   : > { %v1342_v35 = vmax.f32 %v359_v31, %v361_v33  ;;  %v1344_v36 = vmax.f32 %v360_v32, %v362_v34 }
 0x1bd   : > { %484 = vrot.lane.b32.xlu0 %v1344_v36, %s1103_s24  ;;  %365 = vrot.lane.b32.xlu1 %v1342_v35, %s1104_s28 }
 0x1c1   : > { %367 = vrot.lane.b32.xlu1 %v1344_v36, %s1104_s28 }
 0x1c5   : > { %374 = vrot.lane.b32.xlu1 %v1342_v35, %s1105_s9 }
 0x1c9   : > { %376 = vrot.lane.b32.xlu1 %v1344_v36, %s1105_s9 }
 0x1cd   : > { %476 = vrot.lane.b32.xlu1 %v1342_v35, %s1106_s6 }
 0x1d1   : > { %478 = vrot.lane.b32.xlu1 %v1344_v36, %s1106_s6 }
 0x1d5   : > { %482 = vrot.lane.b32.xlu1 %v1342_v35, %s1103_s24 }
 0x22f   : > { %v366_v55 = vpop.permute.xlu1 %365  ;;  %v485_v18 = vpop.permute.xlu0 %484 }
 0x233   : > { %v368_v59 = vpop.permute.xlu1 %367 }
 0x234   : > { %v372_v5 = vsel %vm371_vm1, %v366_v55, %v368_v59  ;;  %v373_v6 = vsel %vm371_vm1, %v368_v59, %v366_v55 }
 0x237   : > { %v375_v1 = vpop.permute.xlu1 %374 }
 0x23b   : > { %v377_v4 = vpop.permute.xlu1 %376 }
 0x23c   : > { %v379_v7 = vsel %vm378_vm2, %v375_v1, %v377_v4  ;;  %v380_v8 = vsel %vm378_vm2, %v377_v4, %v375_v1 }
 0x23d   : > { %v1366_v9 = vsel %vm418_vm3, %v380_v8, %v372_v5  ;;  %v1368_v10 = vsel %vm399_vm4, %v373_v6, %v379_v7  ;;  %v421_v12 = vsel %vm419_vm5, %v379_v7, %v373_v6  ;;  %v400_v28 = vsel %vm398_vm12, %v372_v5, %v380_v8 }
 0x23e   : > { %492 = vrot.lane.b32.xlu1 %v1366_v9, %s1106_s6  ;;  %424 = vrot.lane.b32.xlu0 %v1368_v10, %s1106_s6 }
 0x23f   : > { %v477_v11 = vpop.permute.xlu1 %476 }
 0x242   : > { %494 = vrot.lane.b32.xlu1 %v421_v12, %s1106_s6  ;;  %431 = vrot.lane.b32.xlu0 %v1368_v10, %s1103_s24 }
 0x243   : > { %v479_v14 = vpop.permute.xlu1 %478 }
 0x244   : > { %v480_v20 = vsel %vm426_vm6, %v477_v11, %v479_v14  ;;  %v481_v21 = vsel %vm426_vm6, %v479_v14, %v477_v11 }
 0x246   : > { %498 = vrot.lane.b32.xlu1 %v1366_v9, %s1103_s24 }
 0x247   : > { %v483_v19 = vpop.permute.xlu1 %482 }
 0x248   : > { %v486_v22 = vsel %vm433_vm7, %v483_v19, %v485_v18  ;;  %v487_v23 = vsel %vm433_vm7, %v485_v18, %v483_v19 }
 0x249   : > { %v491_v24 = vsel %vm1381_vm8, %v480_v20, %v487_v23  ;;  %v490_v25 = vsel %vm472_vm9, %v481_v21, %v486_v22  ;;  %v489_v26 = vsel %vm1386_vm10, %v487_v23, %v480_v20  ;;  %v488_v27 = vsel %vm452_vm11, %v486_v22, %v481_v21 }
 0x24a   : > { %500 = vrot.lane.b32.xlu1 %v421_v12, %s1103_s24 }
 0x24e   : > { %422 = vrot.lane.b32.xlu1 %v400_v28, %s1106_s6 }
 0x252   : > { %429 = vrot.lane.b32.xlu1 %v400_v28, %s1103_s24 }
 0x2b0   : > { %v493_v30 = vpop.permute.xlu1 %492  ;;  %v425_v40 = vpop.permute.xlu0 %424 }
 0x2b4   : > { %v495_v31 = vpop.permute.xlu1 %494  ;;  %v432_v46 = vpop.permute.xlu0 %431 }
 0x2b5   : > { %v496_v34 = vsel %vm426_vm6, %v493_v30, %v495_v31  ;;  %v497_v37 = vsel %vm426_vm6, %v495_v31, %v493_v30 }
 0x2b8   : > { %v499_v32 = vpop.permute.xlu1 %498 }
 0x2bc   : > { %v501_v33 = vpop.permute.xlu1 %500 }
 0x2bd   : > { %v502_v38 = vsel %vm433_vm7, %v499_v32, %v501_v33  ;;  %v503_v39 = vsel %vm433_vm7, %v501_v33, %v499_v32 }
 0x2be   : > { %v507_v41 = vsel %vm1381_vm8, %v496_v34, %v503_v39  ;;  %v506_v42 = vsel %vm472_vm9, %v497_v37, %v502_v38  ;;  %v505_v43 = vsel %vm1386_vm10, %v503_v39, %v496_v34  ;;  %v504_v44 = vsel %vm452_vm11, %v502_v38, %v497_v37 }
 0x2bf   : > { %526 = vmatprep.subr.mxu0 %v507_v41 }
 0x2c0   : > { %527 = vmatpush1.msra.mxu0 %v506_v42  ;;  %v423_v45 = vpop.permute.xlu1 %422 }
 0x2c1   : > { %528 = vmatprep.subr.mxu0 %v491_v24  ;;  %v427_v48 = vsel %vm426_vm6, %v423_v45, %v425_v40  ;;  %v428_v49 = vsel %vm426_vm6, %v425_v40, %v423_v45 }
 0x2c2   : > { %529 = vmatpush1.msra.mxu0 %v490_v25 }
 0x2c4   : > { %v430_v47 = vpop.permute.xlu1 %429 }
 0x2c5   : > { %v434_v52 = vsel %vm433_vm7, %v430_v47, %v432_v46  ;;  %v435_v53 = vsel %vm433_vm7, %v432_v46, %v430_v47 }
 0x2c6   : > { %v475_v54 = vsel %vm1381_vm8, %v427_v48, %v435_v53  ;;  %v474_v55 = vsel %vm472_vm9, %v428_v49, %v434_v52  ;;  %v455_v56 = vsel %vm1386_vm10, %v435_v53, %v427_v48  ;;  %v454_v57 = vsel %vm452_vm11, %v434_v52, %v428_v49 }
 0x2c7   : > { %530 = vmatprep.subr.mxu0 %v475_v54 }
 0x2c8   : > { %531 = vmatpush1.msra.mxu0 %v474_v55 }
 0x2c9   : > { %532 = vmatprep.subr.mxu0 %v421_v12 }
 0x2ca   : > { %533 = vmatpush1.msra.mxu0 %v1366_v9 }
 0x2cb   : > { %534 = vmatprep.subr.mxu0 %v1344_v36  ;;  %v1109_v36 = vmov 4  }
 0x2cc   : > { %535 = vmatpush1.msra.mxu0 %v1342_v35  ;;  %877 = vset.pattern.permute.xlu1 %v1109_v36 }
 0x2cd   : > { %536 = vmatprep.subr.mxu0 %v1368_v10 }
 0x2ce   : > { %537 = vmatpush1.msra.mxu0 %v400_v28 }
 0x2cf   : > { %538 = vmatprep.subr.mxu0 %v505_v43 }
 0x2d0   : > { %539 = vmatpush1.msra.mxu0 %v504_v44 }
 0x2d1   : > { %540 = vmatprep.subr.mxu0 %v489_v26 }
 0x2d2   : > { %541 = vmatpush1.msra.mxu0 %v488_v27 }
 0x2d3   : > { %542 = vmatprep.subr.mxu0 %v455_v56 }
 0x2d4   : > { %543 = vmatpush1.msra.mxu0 %v454_v57 }
 0x2d5   : > { %772 = vmatmul.mubr.msk.f32.vlgmr.msra.gmra.mxu0 %vm508_vm13, %v319_v50 }
 0x395   : > { %v578_v51 = vpop.f32.mrf.mxu0 }
 0x397   : > { %v580_v58 = vpop.f32.mrf.mxu0 }
 0x398   : > { %v583_v59 = vadd.f32 %v580_v58, %v578_v51 }
 0x39a   : > { %584 = vadd.xlane.f32.xlu1 %v583_v59 }
 0x3ab   : > { %606 = vperm.xlu1 %877, %v1333_v3  }
 0x423   : > { %v585_v35 = vpop.xlane.xlu1 %584 }
 0x424   : > { %v586_v61 = vmul.f32 0.00390625, %v585_v35 }
 0x426   : > { %v587_v62 = vsub.f32 %v578_v51, %v586_v61  ;;  %v588_v63 = vsub.f32 %v580_v58, %v586_v61 }
 0x427   : > { %v607_v11 = vpop.permute.xlu1 %606 }
 0x428   : > { %v589_v0 = vmul.f32 %v587_v62, %v587_v62  ;;  %v590_v1 = vmul.f32 %v588_v63, %v588_v63 }
 0x42a   : > { %v591_v2 = vadd.f32 %v590_v1, %v589_v0 }
 0x42c   : > { %592 = vadd.xlane.f32.xlu0 %v591_v2 }
 0x442   : > { %600 = vperm.xlu0 %876, %v1333_v3  }
 0x446   : > { %878 = vset.pattern.permute.xlu0 %v1109_v36 }
 0x4b5   : > { %v593_v4 = vpop.xlane.xlu0 %592 }
 0x4b6   : > { %v594_v5 = vmul.f32 0.00390625, %v593_v4 }
 0x4b8   : > { %v595_v6 = vadd.f32 1e-05, %v594_v5 }
 0x4ba   : > { %881 = vrsqrt.f32 %v595_v6 }
 0x4bd   : > { %v601_v8 = vpop.permute.xlu0 %600 }
 0x4c7   : > { %v882_v7 = vpop.eup %881 }
 0x4c8   : > { %v597_v9 = vmul.f32 %v882_v7, %v587_v62  ;;  %v598_v10 = vmul.f32 %v882_v7, %v588_v63 }
 0x4ca   : > { %v603_v12 = vmul.f32 %v601_v8, %v597_v9  ;;  %v604_v13 = vmul.f32 %v601_v8, %v598_v10 }
 0x4cc   : > { %v609_v14 = vadd.f32 %v607_v11, %v603_v12  ;;  %v610_v15 = vadd.f32 %v607_v11, %v604_v13 }
 0x4ce   : > { %v611_v3 = vmul.f32 0.01, %v609_v14  ;;  %v612_v16 = vmul.f32 0.01, %v610_v15 }
 0x4d0   : > { %v613_v17 = vmax.f32 %v609_v14, %v611_v3  ;;  %v614_v18 = vmax.f32 %v610_v15, %v612_v16 }
 0x4d2   : > { %615 = vst [vmem:[%s315_s15] sm:$0xff] %v613_v17  ;;  %616 = vst [vmem:[%s315_s15 + $0x8] sm:$0xff] %v614_v18 }
 0x4d3   : > { %1030 = shalt.err (!%p1027_p9)
}
 0x4d4   : > { %s1031_s26 = scalar_lea.hbm %s1453_s13, 256  ;;  %s1035_s17 = scalar_lea.hbm %s1495_s5, 512 }
 0x4d5   : > { %p1032_p6 = scmp.ne.s32.totalorder %s1453_s13, %s1031_s26  ;;  %p1036_p8 = scmp.lt.s32.totalorder %s1453_s13, %s1495_s5 }
 0x4d6   : > { %p1037_p12 = scmp.lt.s32.totalorder %s1035_s17, %s1031_s26 }
 0x4d7   : > { %p1033_p2 = pnand %p1032_p6, %p1521_p10 }
 0x4d8   : > { %p1038_p5 = por %p1037_p12, %p1036_p8 }
 0x4d9   : > { %p1034_p11 = pneg %p1033_p2 }
 0x4db   : > { %p1039_p7 = pnand %p1038_p5, %p1034_p11 }
 0x4dd   : > { %1042 = shalt.err (!%p1039_p7)
}
 0x4de   : > { %797 = dma.vmem_to_hbm [thread:$0]  (%p1521_p10), %s633_s16, 256, %s1453_s13, %s618_s27  }
 0x4df PF: > { %s644_s9 = sand.u32 1, %s1081_s18   ;;  %p1522_p13 = scmp.ne.s32.totalorder %s1503_s25, 0 }
 0x4e0   : > { %p1523_p0 = scmp.ge.s32.totalorder %s1093_s21, 2  ;;  %s645_s6 = scalar_lea.sflag [#allocation4], %s644_s9 }
 0x4e2   : > { %p817_p1 = pnand %p1523_p0, %p1522_p13 }
 0x4e4   : > { %p818_p3 = pneg %p817_p1 }
 0x4e6   : > { %1076 = dma.done.wait (%p818_p3), %s645_s6, 256  }
 0x4e7   : > { %1078 = vsyncadd (%p818_p3), %s645_s6, 4294967040  ;;  %p22_p4 = scmp.ge.s32.totalorder %s1228_s23, 4   ;;  %s1524_s18 = smov %s1085_s19 }
 0x4e8   : > { %s1525_s19 = smov %s1089_s20  ;;  %s1526_s20 = smov %s1238_s29 }
 0x4e9   : > { %s1527_s21 = smov %s1228_s23  ;;  %24 = sbr.rel (!%p22_p4) target bundleno = 11 (0xb), region = 110 }
 0x4ee   :  { %650 = vsyncpa [#allocation3], 1 }
 0x4ef   :  { %652 = vsyncpa [#allocation3 + $0x1], 1 }
 0x4f0   :  { %653 = vsyncpa [#allocation6], 1 }
 0x4f1   :  { %655 = vsyncpa [#allocation6 + $0x1], 1 }
 0x4f2   :  { %656 = vsyncpa [#allocation9], 1 }
 0x4f3   :  { %657 = vsyncpa [#allocation4], 1 }
 0x4f4   :  { %659 = vsyncpa [#allocation4 + $0x1], 1 }

</bundles_post_ra>
